<compile_context>
chip_gen: v7x
topology: tpu7x:2x2x1
jax: 0.10.0
libtpu: 0.0.40
codegen_flags: <defaults>
</compile_context>

<pallas_src>
import jax
import jax.numpy as jnp
from jax.experimental import pallas as pl
from jax.experimental.pallas import tpu as pltpu

_LANES = 128
_SUBLANES = 8
_DEFAULT_TILE_ROWS = 1024  # batch rows (un-packed units) per grid step


def _round_up(x, m):
    return (x + m - 1) // m * m


def _packed_linear_kernel(x_ref, w_ref, b_ref, o_ref):
    # x_ref: (t_pr, 128)  lane-dense packed samples
    # w_ref: (128, pack)  block-diagonal weight
    # b_ref: (1,) scalar bias in SMEM
    # o_ref: (t_pr, pack)
    y = jnp.dot(x_ref[...], w_ref[...], preferred_element_type=jnp.float32)
    o_ref[...] = (y + b_ref[0]).astype(o_ref.dtype)


def _rowsum_linear_kernel(x_ref, w_ref, b_ref, o_ref):
    # Generic fallback (F does not evenly pack into 128 lanes).
    # VPU multiply + cross-lane reduce; avoids a 1-output-column MXU GEMV.
    x = x_ref[...]                       # (tB, F)
    w = w_ref[...]                       # (1, F)
    y = jnp.sum(x * w, axis=-1, keepdims=True)
    o_ref[...] = (y + b_ref[0]).astype(o_ref.dtype)


def bc_model_forward(samples, weight, bias, *, tile_rows=_DEFAULT_TILE_ROWS):
    """Equivalent of BCModel.forward(samples) == nn.Linear(n_features, 1)(samples).

    samples: (B, F) float32
    weight:  (1, F) float32  (PyTorch nn.Linear layout: (out_features, in_features))
    bias:    (1,)   float32
    returns: (B, 1) float32
    """
    samples = jnp.asarray(samples, jnp.float32)
    weight = jnp.asarray(weight, jnp.float32)
    bias = jnp.asarray(bias, jnp.float32).reshape(1)

    B, F = samples.shape
    cost = pl.CostEstimate(flops=2 * B * F, transcendentals=0,
                           bytes_accessed=4 * (B * F + F + B))
    cparams = pltpu.CompilerParams(dimension_semantics=("parallel",))

    if F <= _LANES and _LANES % F == 0:
        # ---- lane-packed path: (B, F) -> (B/pack, 128) ----
        pack = _LANES // F
        pr = -(-B // pack)                                   # packed rows needed
        t_pr = min(max(tile_rows // pack, _SUBLANES), _round_up(pr, _SUBLANES))
        t_pr = _round_up(t_pr, _SUBLANES)
        pr_pad = _round_up(pr, t_pr)
        b_pad = pr_pad * pack
        if b_pad != B:
            samples = jnp.pad(samples, ((0, b_pad - B), (0, 0)))
        x_packed = samples.reshape(pr_pad, pack * F)          # contiguous reshape
        # Block-diagonal weight: column c holds w in rows [c*F, (c+1)*F).
        w_bd = jnp.kron(jnp.eye(pack, dtype=jnp.float32), weight.reshape(F, 1))

        out = pl.pallas_call(
            _packed_linear_kernel,
            out_shape=jax.ShapeDtypeStruct((pr_pad, pack), jnp.float32),
            grid=(pr_pad // t_pr,),
            in_specs=[
                pl.BlockSpec((t_pr, pack * F), lambda i: (i, 0)),
                pl.BlockSpec((pack * F, pack), lambda i: (0, 0)),
                pl.BlockSpec(memory_space=pltpu.MemorySpace.SMEM),
            ],
            out_specs=pl.BlockSpec((t_pr, pack), lambda i: (i, 0)),
            compiler_params=cparams,
            cost_estimate=cost,
        )(x_packed, w_bd, bias)
        # row r, col c of `out` is the result for original sample pack*r + c
        return out.reshape(b_pad, 1)[:B]

    # ---- generic path: batch-tiled VPU/XLU row reduction ----
    w_row = weight.reshape(1, F)
    tB = _round_up(min(tile_rows, _round_up(B, _SUBLANES)), _SUBLANES)
    b_pad = _round_up(B, tB)
    if b_pad != B:
        samples = jnp.pad(samples, ((0, b_pad - B), (0, 0)))

    out = pl.pallas_call(
        _rowsum_linear_kernel,
        out_shape=jax.ShapeDtypeStruct((b_pad, 1), jnp.float32),
        grid=(b_pad // tB,),
        in_specs=[
            pl.BlockSpec((tB, F), lambda i: (i, 0)),
            pl.BlockSpec((1, F), lambda i: (0, 0)),
            pl.BlockSpec(memory_space=pltpu.MemorySpace.SMEM),
        ],
        out_specs=pl.BlockSpec((tB, 1), lambda i: (i, 0)),
        compiler_params=cparams,
        cost_estimate=cost,
    )(samples, w_row, bias)
    return out[:B]


def bc_model_accuracy(y_predicted, y_true):
    # Plain-JAX glue mirroring BCModel.accuracy (thresholding + mean), not a hot path.
    preds = (y_predicted.flatten() > 0).astype(jnp.int32)
    return jnp.sum(preds == y_true.flatten().astype(jnp.int32)) / y_true.shape[0]


if __name__ == "__main__":
    key = jax.random.PRNGKey(0)
    k_x, k_w, k_b, k_y, k_x2, k_w2, k_b2 = jax.random.split(key, 7)

    batch = 8
    n_features = 32

    # Deterministic synthetic parameters (PyTorch nn.Linear shapes: W (1, F), b (1,))
    bound = 1.0 / (n_features ** 0.5)
    weight = jax.random.uniform(k_w, (1, n_features), jnp.float32, -bound, bound)
    bias = jax.random.uniform(k_b, (1,), jnp.float32, -bound, bound)
    samples = jax.random.normal(k_x, (batch, n_features), jnp.float32)

    out = jax.block_until_ready(bc_model_forward(samples, weight, bias))
    ref = samples @ weight.T + bias
    assert out.shape == (batch, 1)
    assert jnp.allclose(out, ref, atol=1e-4, rtol=1e-4)

    # Exercise the generic (non-packing) fallback path with a feature count
    # that does not divide 128.
    n_features2 = 40
    weight2 = jax.random.uniform(k_w2, (1, n_features2), jnp.float32, -bound, bound)
    bias2 = jax.random.uniform(k_b2, (1,), jnp.float32, -bound, bound)
    samples2 = jax.random.normal(k_x2, (batch, n_features2), jnp.float32)
    out2 = jax.block_until_ready(bc_model_forward(samples2, weight2, bias2))
    ref2 = samples2 @ weight2.T + bias2
    assert out2.shape == (batch, 1)
    assert jnp.allclose(out2, ref2, atol=1e-4, rtol=1e-4)

    # Exercise the accuracy helper too (pure-JAX glue, mirrors BCModel.accuracy).
    y_true = (jax.random.uniform(k_y, (batch,)) > 0.5).astype(jnp.int32)
    _ = jax.block_until_ready(bc_model_accuracy(out, y_true))

    print("KERNEL_OK")
</pallas_src>

<mosaic_0001>
module attributes {stable_mosaic.version = 11 : i64} {
  func.func @_packed_linear_kernel(%arg0: i32, %arg1: memref<8x128xf32, #tpu.memory_space<vmem>>, %arg2: memref<128x4xf32, #tpu.memory_space<vmem>>, %arg3: memref<1xf32, #tpu.memory_space<smem>>, %arg4: memref<8x4xf32, #tpu.memory_space<vmem>>) attributes {dimension_semantics = [#tpu.dimension_semantics<parallel>], iteration_bounds = array<i64: 1>, scalar_prefetch = 0 : i64, scratch_operands = 0 : i64, tpu.core_type = #tpu.core_type<tc>, window_params = [{transform_indices = @transform_0, window_bounds = array<i64: 8, 128>}, {pipeline_mode = #tpu.pipeline_mode<synchronous>, transform_indices = @transform_1, window_bounds = array<i64: 128, 4>}, {transform_indices = @transform_2, window_bounds = array<i64: 1>}, {transform_indices = @transform_3, window_bounds = array<i64: 8, 4>}]} {
    %c0 = arith.constant 0 : index
    %c0_0 = arith.constant 0 : index
    %0 = vector.load %arg1[%c0, %c0_0] : memref<8x128xf32, #tpu.memory_space<vmem>>, vector<8x128xf32>
    %c0_1 = arith.constant 0 : index
    %c0_2 = arith.constant 0 : index
    %1 = vector.load %arg2[%c0_1, %c0_2] : memref<128x4xf32, #tpu.memory_space<vmem>>, vector<128x4xf32>
    %cst = arith.constant dense<0.000000e+00> : vector<8x4xf32>
    %2 = tpu.matmul %0, %1, %cst {dimension_numbers = #tpu.dot_dimension_numbers<[1], [0], [0], [1], [0, 0, 1, 1], [], []>} : vector<8x128xf32>, vector<128x4xf32>, vector<8x4xf32> -> vector<8x4xf32>
    %c0_3 = arith.constant 0 : index
    %3 = memref.load %arg3[%c0_3] : memref<1xf32, #tpu.memory_space<smem>>
    %4 = vector.broadcast %3 : f32 to vector<8x4xf32>
    %5 = arith.addf %2, %4 : vector<8x4xf32>
    %c0_4 = arith.constant 0 : index
    %c0_5 = arith.constant 0 : index
    %6 = vector.load %arg4[%c0_4, %c0_5] : memref<8x4xf32, #tpu.memory_space<vmem>>, vector<8x4xf32>
    tpu.vector_store %arg4[%c0_4, %c0_5], %5 {strides = array<i32>} : memref<8x4xf32, #tpu.memory_space<vmem>>, vector<8x4xf32>,
    return
  }
  func.func @transform_0(%arg0: i32) -> (i32, i32) {
    %c0_i32 = arith.constant 0 : i32
    %c0_i32_0 = arith.constant 0 : i32
    return %arg0, %c0_i32 : i32, i32
  }
  func.func @transform_1(%arg0: i32) -> (i32, i32) {
    %c0_i32 = arith.constant 0 : i32
    %c0_i32_0 = arith.constant 0 : i32
    %c0_i32_1 = arith.constant 0 : i32
    return %c0_i32, %c0_i32_0 : i32, i32
  }
  func.func @transform_2(%arg0: i32) -> i32 {
    %c0_i32 = arith.constant 0 : i32
    %c0_i32_0 = arith.constant 0 : i32
    return %c0_i32 : i32
  }
  func.func @transform_3(%arg0: i32) -> (i32, i32) {
    %c0_i32 = arith.constant 0 : i32
    %c0_i32_0 = arith.constant 0 : i32
    return %arg0, %c0_i32 : i32, i32
  }
}

</mosaic_0001>

<bundles_post_ra>
// kernel: tpu_custom_call.1
= control target key start
LH: loop header
LB: loop body
LE: loop exit
PB: predicated region body
PF: predicated region fallthrough
CT: control target
= control target key end

     0   :  { %v189_v0 = vmov 0.0|0.0   ;;  %vm190_vm0 = vmmov 0   ;;  %v191_v4 = vmov 0.0   ;;  %vm104_vm1 = vcmask 31744   ;;  %s269_s1 = inlined_call_operand.vmem [shape: f32[128,4], index: 1, kind: input, shape index: {}]   ;;  %s270_s0 = inlined_call_operand.vmem [shape: f32[8,128], index: 0, kind: input, shape index: {}]   ;;  %s271_s2 = inlined_call_operand.<no memory space> [shape: f32[1], index: 2, kind: input, shape index: {}]   ;;  %s272_s3 = inlined_call_operand.vmem [shape: f32[8,4], index: 3, kind: output, shape index: {}]  }
   0x1   :  { %162 = vmatprep.subr.bf16.mxu0 %v189_v0  ;;  %v16_v1 = vld [vmem:[%s269_s1] sm:$0xff]  ;;  %v17_v2 = vld [vmem:[%s269_s1 + $0x8] sm:$0xff]  ;;  %v18_v3 = vld [vmem:[%s269_s1 + $0x10] sm:$0xff]  ;;  %159 = vmatprep.mubr.msk.f32.mxu0 %vm190_vm0, %v191_v4  ;;  %v33_v27 = vstv %s271_s2 }
   0x2   :  { %v163_v5 = vpack.c.bf16 %v17_v2, %v16_v1  ;;  %v19_v6 = vld [vmem:[%s269_s1 + $0x18] sm:$0xff]  ;;  %v20_v8 = vld [vmem:[%s269_s1 + $0x20] sm:$0xff]  ;;  %v21_v9 = vld [vmem:[%s269_s1 + $0x28] sm:$0xff] }
   0x3   :  { %v166_v7 = vpack.c.bf16 %v19_v6, %v18_v3  ;;  %v169_v10 = vpack.c.bf16 %v21_v9, %v20_v8  ;;  %v22_v11 = vld [vmem:[%s269_s1 + $0x30] sm:$0xff]  ;;  %v23_v12 = vld [vmem:[%s269_s1 + $0x38] sm:$0xff]  ;;  %v24_v14 = vld [vmem:[%s269_s1 + $0x40] sm:$0xff] }
   0x4   :  { %164 = vmatpush3.bf16.msra.mxu0 %v163_v5  ;;  %v172_v13 = vpack.c.bf16 %v23_v12, %v22_v11  ;;  %v25_v15 = vld [vmem:[%s269_s1 + $0x48] sm:$0xff]  ;;  %v26_v17 = vld [vmem:[%s269_s1 + $0x50] sm:$0xff]  ;;  %v27_v18 = vld [vmem:[%s269_s1 + $0x58] sm:$0xff] }
   0x5   :  { %165 = vmatprep.subr.bf16.mxu0 %v189_v0  ;;  %v175_v16 = vpack.c.bf16 %v25_v15, %v24_v14  ;;  %v178_v19 = vpack.c.bf16 %v27_v18, %v26_v17  ;;  %v28_v20 = vld [vmem:[%s269_s1 + $0x60] sm:$0xff]  ;;  %v29_v21 = vld [vmem:[%s269_s1 + $0x68] sm:$0xff]  ;;  %v30_v23 = vld [vmem:[%s269_s1 + $0x70] sm:$0xff] }
   0x6   :  { %v181_v22 = vpack.c.bf16 %v29_v21, %v28_v20  ;;  %v31_v24 = vld [vmem:[%s269_s1 + $0x78] sm:$0xff]  ;;  %v15_v26 = vld [vmem:[%s270_s0] sm:$0xff] }
   0x7   :  { %v184_v25 = vpack.c.bf16 %v31_v24, %v30_v23 }
   0x8   :  { %167 = vmatpush3.bf16.msra.mxu0 %v166_v7 }
   0x9   :  { %168 = vmatprep.subr.bf16.mxu0 %v189_v0 }
   0xc   :  { %170 = vmatpush3.bf16.msra.mxu0 %v169_v10 }
   0xd   :  { %171 = vmatprep.subr.bf16.mxu0 %v189_v0 }
  0x10   :  { %173 = vmatpush3.bf16.msra.mxu0 %v172_v13 }
  0x11   :  { %174 = vmatprep.subr.bf16.mxu0 %v189_v0 }
  0x14   :  { %176 = vmatpush3.bf16.msra.mxu0 %v175_v16 }
  0x15   :  { %177 = vmatprep.subr.bf16.mxu0 %v189_v0 }
  0x18   :  { %179 = vmatpush3.bf16.msra.mxu0 %v178_v19 }
  0x19   :  { %180 = vmatprep.subr.bf16.mxu0 %v189_v0 }
  0x1c   :  { %182 = vmatpush3.bf16.msra.mxu0 %v181_v22 }
  0x1d   :  { %183 = vmatprep.subr.bf16.mxu0 %v189_v0 }
  0x20   :  { %185 = vmatpush3.bf16.msra.mxu0 %v184_v25 }
  0x23   :  { %160 = vmatmul.mubr.f32.vlgmr.msra.gmra.mrb[0].mxu0 %v15_v26 }
  0xf6   :  { %v100_v28 = vpop.f32.mrb[0].mxu0 }
  0xf7   :  { %v101_v29 = vadd.f32 %v100_v28, %v33_v27  ;;  %v161_v30 = vpop.f32.mrb[1].mxu0 }
  0xf9   :  { %105 = vst.msk [vmem:[%s272_s3] sm:$0xff] %vm104_vm1, %v101_v29 }

</bundles_post_ra>
